<compile_context>
chip_gen: v6e
topology: v6e:2x2x1
jax: 0.10.0
libtpu: 0.0.40
codegen_flags: <defaults>
</compile_context>

<pallas_src>
import functools
import math

import jax
import jax.numpy as jnp
from jax.experimental import pallas as pl
from jax.experimental.pallas import tpu as pltpu


def _default_vmem_limit_bytes():
    """~40 MiB on v7x (64 MiB physical), up to 100 MiB on v5e/v6e (128 MiB)."""
    cap = None
    try:
        info = pltpu.get_tpu_info()
        cap = getattr(info, "vmem_capacity_bytes", None)
    except Exception:
        cap = None
    if not cap:
        cap = 128 * 1024 * 1024
    return int(max(32 * 1024 * 1024,
                   min(cap - 24 * 1024 * 1024, 100 * 1024 * 1024)))


def softtriple_kernel(x_ref, tgt_ref, centers_ref, out_ref, *,
                      la, invgamma, margin, cN, cN_pad, K, B, TB, exp_dtype):
    pid = pl.program_id(0)

    # ---- simInd = x @ centers  (bf16 operands, f32 MXU accumulation) --------
    sim = jnp.dot(x_ref[...], centers_ref[...],
                  preferred_element_type=jnp.float32)            # (TB, K*cN_pad)

    # ---- per-class softmax over K proxies: K lane-aligned slices of sim -----
    # class-minor layout => proxy slot k of every class is columns
    # [k*cN_pad, (k+1)*cN_pad); cN_pad % 128 == 0 makes the slices free aliases.
    slots = [sim[:, k * cN_pad:(k + 1) * cN_pad] for k in range(K)]
    gmax = slots[0]
    for k in range(1, K):
        gmax = jnp.maximum(gmax, slots[k])
    denom = jnp.zeros((TB, cN_pad), jnp.float32)
    numer = jnp.zeros((TB, cN_pad), jnp.float32)
    for k in range(K):
        arg = (slots[k] - gmax) * jnp.float32(invgamma)
        if jnp.dtype(exp_dtype) == jnp.dtype(jnp.float32):
            e = jnp.exp(arg)
        else:
            # v6e/v7x option: bf16 EUP exp when the exp slot is the binding
            # unit (small dim); accumulation stays f32.  Not for v5e.
            e = jnp.exp(arg.astype(exp_dtype)).astype(jnp.float32)
        denom = denom + e
        numer = numer + e * slots[k]
    simClass = numer / denom                                     # exact; denom >= 1

    # ---- cross entropy with margin on the target class ----------------------
    # Targets arrive lane-dense as (1, TB); one small lane->sublane relayout
    # gives the (TB, 1) column for the one-hot compare.
    tgt_col = jnp.transpose(tgt_ref[...])                        # (TB, 1) int32
    cls_iota = jax.lax.broadcasted_iota(jnp.int32, (TB, cN_pad), 1)
    onehot = (cls_iota == tgt_col).astype(jnp.float32)           # (TB, cN_pad)
    class_valid = cls_iota < cN                                   # mask padded classes

    logits = jnp.float32(la) * (simClass - jnp.float32(margin) * onehot)
    logits = jnp.where(class_valid, logits, jnp.float32(-1e30))
    lmax = jnp.max(logits, axis=-1, keepdims=True)                # (TB, 1)
    lse = lmax + jnp.log(jnp.sum(jnp.exp(logits - lmax), axis=-1, keepdims=True))
    tgt_logit = jnp.float32(la) * (
        jnp.sum(simClass * onehot, axis=-1, keepdims=True) - jnp.float32(margin))

    # mask batch-padding rows; pre-scale by 1/B so the wrapper only sums tiles
    row = pid * TB + jax.lax.broadcasted_iota(jnp.int32, (TB, 1), 0)
    valid = (row < B).astype(jnp.float32)
    partial = jnp.sum((lse - tgt_logit) * valid) * jnp.float32(1.0 / B)

    out_ref[...] = jnp.broadcast_to(partial, (1, 8, 128)).astype(jnp.float32)


def softtriple_forward(x, fc, target, *, la, gamma, tau, margin, cN, K,
                       matmul_dtype=jnp.bfloat16, exp_dtype=jnp.float32,
                       tile_b=None):
    """SoftTriple forward. x:(B,dim), fc:(dim,cN*K), target:(B,) int -> scalar."""
    x = jnp.asarray(x, jnp.float32)
    fc = jnp.asarray(fc, jnp.float32)
    B, dim = x.shape
    cNK = cN * K
    assert fc.shape == (dim, cNK)

    # ---- centers = F.normalize(fc, p=2, dim=0): hoisted to wrapper, f32 -----
    inv_norm = jax.lax.rsqrt(
        jnp.maximum(jnp.sum(fc * fc, axis=0, keepdims=True), jnp.float32(1e-24)))
    centers = fc * inv_norm                                      # (dim, cN*K) f32

    # ---- class-minor, lane-padded layout (kernel column = k*cN_pad + c) -----
    cN_pad = -(-cN // 128) * 128
    cr = centers.reshape(dim, cN, K).transpose(0, 2, 1)          # (dim, K, cN)
    cr = jnp.pad(cr, ((0, 0), (0, 0), (0, cN_pad - cN)))         # zero-pad classes
    centers_km = cr.reshape(dim, K * cN_pad).astype(matmul_dtype)

    # ---- batch tiling: TB multiple of 16 (bf16 sublane packing), default 256
    if tile_b is None:
        tile_b = 256 if B >= 256 else -(-B // 16) * 16
    TB = int(tile_b)
    num_tiles = -(-B // TB)
    B_pad = num_tiles * TB
    if B_pad != B:
        x = jnp.pad(x, ((0, B_pad - B), (0, 0)))
        target = jnp.pad(target, (0, B_pad - B))
    x_mm = x.astype(matmul_dtype)                                # bf16 x in HBM
    tgt = target.astype(jnp.int32).reshape(num_tiles, TB)        # lane-dense

    kernel = functools.partial(
        softtriple_kernel,
        la=float(la), invgamma=1.0 / float(gamma), margin=float(margin),
        cN=cN, cN_pad=cN_pad, K=K, B=B, TB=TB, exp_dtype=exp_dtype)

    grid_spec = pltpu.PrefetchScalarGridSpec(
        num_scalar_prefetch=0,
        grid=(num_tiles,),
        in_specs=[
            pl.BlockSpec((TB, dim), lambda i: (i, 0)),           # bf16 x tile
            pl.BlockSpec((1, TB), lambda i: (i, 0)),             # lane-dense targets
            # Resident, pre-normalized bf16 centers (constant index_map, so it
            # is never re-fetched; on v7x pipeline_mode=pl.Buffered(1) would
            # additionally drop its second VMEM buffer).
            pl.BlockSpec((dim, K * cN_pad), lambda i: (0, 0)),
        ],
        out_specs=pl.BlockSpec((1, 8, 128), lambda i: (i, 0, 0)),
    )

    partials = pl.pallas_call(
        kernel,
        out_shape=jax.ShapeDtypeStruct((num_tiles, 8, 128), jnp.float32),
        grid_spec=grid_spec,
        compiler_params=pltpu.CompilerParams(
            dimension_semantics=("parallel",),                   # both TCs on v7x
            vmem_limit_bytes=_default_vmem_limit_bytes()),
    )(x_mm, tgt, centers_km)

    loss = jnp.sum(partials[:, 0, 0])

    # ---- regularizer over within-class proxy pairs (f32, tiny; in wrapper) --
    if tau > 0.0 and K > 1:
        cr32 = centers.reshape(dim, cN, K)                       # column c*K + k
        sims = jnp.einsum('dck,dcl->ckl', cr32, cr32)            # (cN, K, K)
        pair_mask = jnp.triu(jnp.ones((K, K), dtype=bool), k=1)[None, :, :]
        dist = jnp.sqrt(jnp.maximum(2.0 + 1e-5 - 2.0 * sims, 0.0))
        reg = jnp.sum(jnp.where(pair_mask, dist, 0.0)) / (cN * K * (K - 1.0))
        loss = loss + jnp.float32(tau) * reg
    return loss


def softtriple_reference(x, fc, target, *, la, gamma, tau, margin, cN, K,
                         matmul_dtype=jnp.float32):
    """Pure-JAX reference mirroring the PyTorch forward (optionally bf16 matmul)."""
    invgamma = 1.0 / gamma
    centers = fc / jnp.maximum(jnp.linalg.norm(fc, axis=0, keepdims=True), 1e-12)
    simInd = jnp.dot(x.astype(matmul_dtype), centers.astype(matmul_dtype),
                     preferred_element_type=jnp.float32).astype(jnp.float32)
    simStruc = simInd.reshape(-1, cN, K)
    prob = jax.nn.softmax(simStruc * invgamma, axis=2)
    simClass = jnp.sum(prob * simStruc, axis=2)
    marginM = margin * jax.nn.one_hot(target, cN, dtype=jnp.float32)
    logits = la * (simClass - marginM)
    logp = jax.nn.log_softmax(logits, axis=1)
    loss_classify = -jnp.mean(jnp.take_along_axis(logp, target[:, None], axis=1))
    if tau > 0 and K > 1:
        simCenter = centers.T @ centers
        rows = jnp.arange(cN * K)
        mask = (((rows[:, None] // K) == (rows[None, :] // K)) &
                (rows[None, :] > rows[:, None]))
        reg = jnp.sum(jnp.where(mask, jnp.sqrt(2.0 + 1e-5 - 2.0 * simCenter), 0.0))
        reg = reg / (cN * K * (K - 1.0))
        return loss_classify + tau * reg
    return loss_classify


if __name__ == "__main__":
    # Typical SoftTriple hyperparameters, small demo shapes.
    la, gamma, tau, margin = 20.0, 0.1, 0.2, 0.01
    dim, cN, K = 32, 4, 3
    B = 8

    key = jax.random.PRNGKey(0)
    k_x, k_fc, k_t = jax.random.split(key, 3)

    # Deterministic stand-in for kaiming_uniform_(a=sqrt(5)).
    bound = 1.0 / math.sqrt(cN * K)
    fc = jax.random.uniform(k_fc, (dim, cN * K), jnp.float32, -bound, bound)
    x = jax.random.normal(k_x, (B, dim), jnp.float32)
    target = jax.random.randint(k_t, (B,), 0, cN, jnp.int32)

    loss = softtriple_forward(x, fc, target, la=la, gamma=gamma, tau=tau,
                              margin=margin, cN=cN, K=K)
    loss = jax.block_until_ready(loss)

    # Precision-matched reference (bf16 simInd matmul, like the kernel) and the
    # full-f32 reference as a gross sanity check (la/gamma amplify bf16 noise).
    ref_bf16 = softtriple_reference(x, fc, target, la=la, gamma=gamma, tau=tau,
                                    margin=margin, cN=cN, K=K,
                                    matmul_dtype=jnp.bfloat16)
    ref_f32 = softtriple_reference(x, fc, target, la=la, gamma=gamma, tau=tau,
                                   margin=margin, cN=cN, K=K,
                                   matmul_dtype=jnp.float32)

    assert jnp.isfinite(loss), "loss is not finite"
    assert abs(float(loss) - float(ref_bf16)) < 3e-2, (float(loss), float(ref_bf16))
    assert abs(float(loss) - float(ref_f32)) < 0.3, (float(loss), float(ref_f32))

    print("KERNEL_OK")
</pallas_src>

<mosaic_0001>
module attributes {stable_mosaic.version = 11 : i64} {
  func.func @softtriple_kernel(%arg0: i32, %arg1: memref<16x32xbf16, #tpu.memory_space<vmem>>, %arg2: memref<1x16xi32, #tpu.memory_space<vmem>>, %arg3: memref<32x384xbf16, #tpu.memory_space<vmem>>, %arg4: memref<1x8x128xf32, #tpu.memory_space<vmem>>) attributes {dimension_semantics = [#tpu.dimension_semantics<parallel>], iteration_bounds = array<i64: 1>, scalar_prefetch = 0 : i64, scratch_operands = 0 : i64, tpu.core_type = #tpu.core_type<tc>, window_params = [{transform_indices = @transform_0, window_bounds = array<i64: 16, 32>}, {transform_indices = @transform_1, window_bounds = array<i64: 1, 16>}, {pipeline_mode = #tpu.pipeline_mode<synchronous>, transform_indices = @transform_2, window_bounds = array<i64: 32, 384>}, {transform_indices = @transform_3, window_bounds = array<i64: 1, 8, 128>}]} {
    %c0 = arith.constant 0 : index
    %c0_0 = arith.constant 0 : index
    %0 = vector.load %arg1[%c0, %c0_0] : memref<16x32xbf16, #tpu.memory_space<vmem>>, vector<16x32xbf16>
    %c0_1 = arith.constant 0 : index
    %c0_2 = arith.constant 0 : index
    %1 = vector.load %arg3[%c0_1, %c0_2] : memref<32x384xbf16, #tpu.memory_space<vmem>>, vector<32x384xbf16>
    %cst = arith.constant dense<0.000000e+00> : vector<16x384xf32>
    %2 = tpu.matmul %0, %1, %cst {dimension_numbers = #tpu.dot_dimension_numbers<[1], [0], [0], [1], [0, 0, 1, 1], [], []>} : vector<16x32xbf16>, vector<32x384xbf16>, vector<16x384xf32> -> vector<16x384xf32>
    %3 = vector.extract_strided_slice %2 {offsets = [0, 0], sizes = [16, 128], strides = [1, 1]} : vector<16x384xf32> to vector<16x128xf32>
    %4 = vector.extract_strided_slice %2 {offsets = [0, 128], sizes = [16, 128], strides = [1, 1]} : vector<16x384xf32> to vector<16x128xf32>
    %5 = vector.extract_strided_slice %2 {offsets = [0, 256], sizes = [16, 128], strides = [1, 1]} : vector<16x384xf32> to vector<16x128xf32>
    %6 = arith.maximumf %3, %4 : vector<16x128xf32>
    %7 = arith.maximumf %6, %5 : vector<16x128xf32>
    %cst_3 = arith.constant 0.000000e+00 : f32
    %8 = vector.broadcast %cst_3 : f32 to vector<16x128xf32>
    %cst_4 = arith.constant 0.000000e+00 : f32
    %9 = vector.broadcast %cst_4 : f32 to vector<16x128xf32>
    %10 = arith.subf %3, %7 : vector<16x128xf32>
    %cst_5 = arith.constant 1.000000e+01 : f32
    %11 = vector.broadcast %cst_5 : f32 to vector<16x128xf32>
    %12 = arith.mulf %10, %11 : vector<16x128xf32>
    %13 = math.exp %12 : vector<16x128xf32>
    %14 = arith.addf %8, %13 : vector<16x128xf32>
    %15 = arith.mulf %13, %3 : vector<16x128xf32>
    %16 = arith.addf %9, %15 : vector<16x128xf32>
    %17 = arith.subf %4, %7 : vector<16x128xf32>
    %cst_6 = arith.constant 1.000000e+01 : f32
    %18 = vector.broadcast %cst_6 : f32 to vector<16x128xf32>
    %19 = arith.mulf %17, %18 : vector<16x128xf32>
    %20 = math.exp %19 : vector<16x128xf32>
    %21 = arith.addf %14, %20 : vector<16x128xf32>
    %22 = arith.mulf %20, %4 : vector<16x128xf32>
    %23 = arith.addf %16, %22 : vector<16x128xf32>
    %24 = arith.subf %5, %7 : vector<16x128xf32>
    %cst_7 = arith.constant 1.000000e+01 : f32
    %25 = vector.broadcast %cst_7 : f32 to vector<16x128xf32>
    %26 = arith.mulf %24, %25 : vector<16x128xf32>
    %27 = math.exp %26 : vector<16x128xf32>
    %28 = arith.addf %21, %27 : vector<16x128xf32>
    %29 = arith.mulf %27, %5 : vector<16x128xf32>
    %30 = arith.addf %23, %29 : vector<16x128xf32>
    %31 = arith.divf %30, %28 : vector<16x128xf32>
    %c0_8 = arith.constant 0 : index
    %c0_9 = arith.constant 0 : index
    %32 = vector.load %arg2[%c0_8, %c0_9] : memref<1x16xi32, #tpu.memory_space<vmem>>, vector<1x16xi32>
    %33 = tpu.transpose %32, [1, 0] : vector<1x16xi32> -> vector<16x1xi32>
    %34 = tpu.iota {dimensions = array<i32: 1>} : vector<16x128xi32>
    %35 = vector.broadcast %33 : vector<16x1xi32> to vector<16x128xi32>
    %36 = arith.cmpi eq, %34, %35 : vector<16x128xi32>
    %37 = arith.extui %36 : vector<16x128xi1> to vector<16x128xi32>
    %38 = arith.sitofp %37 : vector<16x128xi32> to vector<16x128xf32>
    %c4_i32 = arith.constant 4 : i32
    %39 = vector.broadcast %c4_i32 : i32 to vector<16x128xi32>
    %40 = arith.cmpi slt, %34, %39 : vector<16x128xi32>
    %cst_10 = arith.constant 0.00999999977 : f32
    %41 = vector.broadcast %cst_10 : f32 to vector<16x128xf32>
    %42 = arith.mulf %41, %38 : vector<16x128xf32>
    %43 = arith.subf %31, %42 : vector<16x128xf32>
    %cst_11 = arith.constant 2.000000e+01 : f32
    %44 = vector.broadcast %cst_11 : f32 to vector<16x128xf32>
    %45 = arith.mulf %44, %43 : vector<16x128xf32>
    %cst_12 = arith.constant -1.000000e+30 : f32
    %46 = vector.broadcast %cst_12 : f32 to vector<16x128xf32>
    %47 = arith.select %40, %45, %46 : vector<16x128xi1>, vector<16x128xf32>
    %cst_13 = arith.constant dense<0xFF800000> : vector<16xf32>
    %48 = vector.multi_reduction <maximumf>, %47, %cst_13 [1] : vector<16x128xf32> to vector<16xf32>
    %49 = vector.shape_cast %48 : vector<16xf32> to vector<16x1xf32>
    %50 = vector.broadcast %49 : vector<16x1xf32> to vector<16x128xf32>
    %51 = arith.subf %47, %50 : vector<16x128xf32>
    %52 = math.exp %51 : vector<16x128xf32>
    %cst_14 = arith.constant dense<0.000000e+00> : vector<16xf32>
    %53 = vector.multi_reduction <add>, %52, %cst_14 [1] : vector<16x128xf32> to vector<16xf32>
    %54 = vector.shape_cast %53 : vector<16xf32> to vector<16x1xf32>
    %55 = math.log %54 : vector<16x1xf32>
    %56 = arith.addf %49, %55 : vector<16x1xf32>
    %57 = arith.mulf %31, %38 : vector<16x128xf32>
    %cst_15 = arith.constant dense<0.000000e+00> : vector<16xf32>
    %58 = vector.multi_reduction <add>, %57, %cst_15 [1] : vector<16x128xf32> to vector<16xf32>
    %59 = vector.shape_cast %58 : vector<16xf32> to vector<16x1xf32>
    %cst_16 = arith.constant 0.00999999977 : f32
    %60 = vector.broadcast %cst_16 : f32 to vector<16x1xf32>
    %61 = arith.subf %59, %60 : vector<16x1xf32>
    %cst_17 = arith.constant 2.000000e+01 : f32
    %62 = vector.broadcast %cst_17 : f32 to vector<16x1xf32>
    %63 = arith.mulf %62, %61 : vector<16x1xf32>
    %c16_i32 = arith.constant 16 : i32
    %64 = arith.muli %arg0, %c16_i32 : i32
    %65 = tpu.iota {dimensions = array<i32: 0>} : vector<16x1xi32>
    %66 = vector.broadcast %64 : i32 to vector<16x1xi32>
    %67 = arith.addi %66, %65 : vector<16x1xi32>
    %c8_i32 = arith.constant 8 : i32
    %68 = vector.broadcast %c8_i32 : i32 to vector<16x1xi32>
    %69 = arith.cmpi slt, %67, %68 : vector<16x1xi32>
    %70 = arith.extui %69 : vector<16x1xi1> to vector<16x1xi32>
    %71 = arith.sitofp %70 : vector<16x1xi32> to vector<16x1xf32>
    %72 = arith.subf %56, %63 : vector<16x1xf32>
    %73 = arith.mulf %72, %71 : vector<16x1xf32>
    %74 = vector.shape_cast %73 : vector<16x1xf32> to vector<1x16x1xf32>
    %cst_18 = arith.constant dense<0.000000e+00> : vector<1xf32>
    %75 = vector.multi_reduction <add>, %74, %cst_18 [1, 2] : vector<1x16x1xf32> to vector<1xf32>
    %76 = vector.shape_cast %75 : vector<1xf32> to vector<1x1x1xf32>
    %77 = vector.extract %76[0, 0, 0] : f32 from vector<1x1x1xf32>
    %cst_19 = arith.constant 1.250000e-01 : f32
    %78 = arith.mulf %77, %cst_19 : f32
    %79 = vector.broadcast %78 : f32 to vector<1x8x128xf32>
    %c0_20 = arith.constant 0 : index
    %c0_21 = arith.constant 0 : index
    %c0_22 = arith.constant 0 : index
    %80 = vector.load %arg4[%c0_20, %c0_21, %c0_22] : memref<1x8x128xf32, #tpu.memory_space<vmem>>, vector<1x8x128xf32>
    tpu.vector_store %arg4[%c0_20, %c0_21, %c0_22], %79 {strides = array<i32>} : memref<1x8x128xf32, #tpu.memory_space<vmem>>, vector<1x8x128xf32>,
    return
  }
  func.func @transform_0(%arg0: i32) -> (i32, i32) {
    %c0_i32 = arith.constant 0 : i32
    %c0_i32_0 = arith.constant 0 : i32
    return %arg0, %c0_i32 : i32, i32
  }
  func.func @transform_1(%arg0: i32) -> (i32, i32) {
    %c0_i32 = arith.constant 0 : i32
    %c0_i32_0 = arith.constant 0 : i32
    return %arg0, %c0_i32 : i32, i32
  }
  func.func @transform_2(%arg0: i32) -> (i32, i32) {
    %c0_i32 = arith.constant 0 : i32
    %c0_i32_0 = arith.constant 0 : i32
    %c0_i32_1 = arith.constant 0 : i32
    return %c0_i32, %c0_i32_0 : i32, i32
  }
  func.func @transform_3(%arg0: i32) -> (i32, i32, i32) {
    %c0_i32 = arith.constant 0 : i32
    %c0_i32_0 = arith.constant 0 : i32
    %c0_i32_1 = arith.constant 0 : i32
    return %arg0, %c0_i32, %c0_i32_0 : i32, i32, i32
  }
}

</mosaic_0001>

<bundles_post_ra>
// kernel: tpu_custom_call.1
= control target key start
LH: loop header
LB: loop body
LE: loop exit
PB: predicated region body
PF: predicated region fallthrough
CT: control target
= control target key end

     0   :  { %8 = vsyncpa [#allocation3], 0  ;;  %s548_s0 = inlined_call_operand.hbm [shape: bf16[16,32], index: 0, kind: input, shape index: {}]   ;;  %s549_s1 = inlined_call_operand.vmem [shape: s32[1,16], index: 1, kind: input, shape index: {}]   ;;  %s550_s2 = inlined_call_operand.hbm [shape: bf16[32,384], index: 2, kind: input, shape index: {}]   ;;  %s551_s3 = inlined_call_operand.hbm [shape: f32[1,8,128], index: 3, kind: output, shape index: {}]  }
   0x1   :  { %9 = vsyncpa [#allocation6], 0 }
   0x2   :  { %10 = vsyncpa [#allocation4], 0  ;;  %s501_s12 = smov [#allocation2]  }
   0x3   :  { %s16_s13 = sshll.u32 %s501_s12, 4  ;;  %s17_s13 = int_to_ptr.vmem [resolvable:$true] %s16_s13 }
   0x4   :  { %s443_s14 = scalar_lea.vmem %s17_s13, 128  ;;  %p448_p1 = scmp.lt.s32.totalorder %s17_s13, %s17_s13 }
   0x5   :  { %p444_p0 = scmp.ne.s32.totalorder %s17_s13, %s443_s14  ;;  %p449_p2 = scmp.lt.s32.totalorder %s443_s14, %s443_s14 }
   0x7   :  { %p450_p3 = por %p449_p2, %p448_p1 }
   0x9   :  { %p451_p4 = pnand %p450_p3, %p444_p0 }
   0xb   :  { %454 = shalt.err (!%p451_p4)
}
   0xc   :  { %s502_s15 = smov 64   ;;  %s503_s16 = smov 4  }
   0xd   :  { %22 = dma.hbm_to_vmem [thread:$0]  %s548_s0, 128, %s17_s13, [#allocation3], %s502_s15, %s502_s15, %s503_s16  }
   0xe   :  { %s504_s19 = smov [#allocation5]  }
   0xf   :  { %s30_s20 = sshll.u32 %s504_s19, 4  ;;  %s31_s20 = int_to_ptr.vmem [resolvable:$true] %s30_s20 }
  0x10   :  { %s463_s21 = scalar_lea.vmem %s31_s20, 768  ;;  %p468_p6 = scmp.lt.s32.totalorder %s31_s20, %s31_s20 }
  0x11   :  { %p464_p5 = scmp.ne.s32.totalorder %s31_s20, %s463_s21  ;;  %p469_p7 = scmp.lt.s32.totalorder %s463_s21, %s463_s21 }
  0x13   :  { %p470_p8 = por %p469_p7, %p468_p6 }
  0x15   :  { %p471_p9 = pnand %p470_p8, %p464_p5 }
  0x17   :  { %474 = shalt.err (!%p471_p9)
}
  0x18   :  { %s505_s22 = smov 192   ;;  %s506_s23 = smov 12  }
  0x19   :  { %36 = dma.hbm_to_vmem [thread:$0]  %s550_s2, 768, %s31_s20, [#allocation6], %s505_s22, %s505_s22, %s506_s23  }
  0x1a   :  { %495 = dma.done.wait [#allocation3], 128  }
  0x1b   :  { %496 = vsyncadd [#allocation3], 4294967168 }
  0x1c   :  { %497 = dma.done.wait [#allocation6], 768  }
  0x1d   :  { %498 = vsyncadd [#allocation6], 4294966528  ;;  %v507_v0 = vmov 0.0   ;;  %v508_v1 = vmov 0   ;;  %vm509_vm0 = vmmov 0   ;;  %v410_v9 = vld [vmem:[#allocation2] sm:$0xff]   ;;  %v262_v54 = vlaneseq }
  0x1e   :  { %380 = vmatprep.subr.bf16.mxu1 %v507_v0  ;;  %127 = vmatprep.mubr.bf16.mxu0 %v508_v1  ;;  %v229_v2 = vld [vmem:[%s549_s1] sm:$0x1]  ;;  %v402_v3 = vld [vmem:[#allocation5 + $0x1c] ss:$12 sps:$4 sm:$0xff]   ;;  %v405_v5 = vld [vmem:[#allocation5 + $0x20] ss:$12 sps:$4 sm:$0xff]  }
  0x1f   :  { %384 = vmatprep.mubr.msk.bf16.mxu1 %vm509_vm0, %v507_v0  ;;  %401 = vset.pattern.permute.xlu1 %v508_v1  ;;  %v404_v4 = vld [vmem:[#allocation5 + $0x18] ss:$12 sps:$4 sm:$0xff]   ;;  %v408_v7 = vld [vmem:[#allocation5] ss:$12 sps:$4 sm:$0xff]   ;;  %v409_v8 = vld [vmem:[#allocation5 + $0x8] ss:$12 sps:$4 sm:$0xff]  }
  0x20   :  { %230 = vxpose.xlu0.b32.start.end [1/1] (short) (narrow) %v229_v2, 16  ;;  %107 = vmatprep.subr.bf16.mxu0 %v402_v3  ;;  %v406_v6 = vld [vmem:[#allocation5 + $0x4] ss:$12 sps:$4 sm:$0xff]   ;;  %vm91_vm1 = vcmask 261120   ;;  %v263_v59 = vand.u32 127, %v262_v54  ;;  %vm332_vm5 = vcmask 7168  }
  0x21   :  { %108 = vmatpush1.bf16.msra.mxu0 %v404_v4  ;;  %381 = vmatpush3.bf16.msra.mxu1 %v405_v5  ;;  %s510_s1 = smov [#allocation7]  }
  0x22   :  { %109 = vmatprep.subr.bf16.mxu0 %v406_v6  ;;  %382 = vmatprep.subr.bf16.mxu1 %v507_v0  ;;  %vm276_vm4 = vcmp.lt.s32.totalorder %v263_v59, 4  ;;  %s354_s2 = sshll.u32 %s510_s1, 4  ;;  %s355_s2 = int_to_ptr.vmem [resolvable:$true] %s354_s2 }
  0x23   :  { %s475_s29 = scalar_lea.vmem %s355_s2, 128  ;;  %p480_p11 = scmp.lt.s32.totalorder %s355_s2, %s355_s2 }
  0x24   :  { %p476_p10 = scmp.ne.s32.totalorder %s355_s2, %s475_s29  ;;  %p481_p12 = scmp.lt.s32.totalorder %s475_s29, %s475_s29 }
  0x25   :  { %110 = vmatpush1.bf16.msra.mxu0 %v408_v7  ;;  %383 = vmatpush3.bf16.msra.mxu1 %v409_v8 }
  0x26   :  { %p482_p13 = por %p481_p12, %p480_p11 }
  0x28   :  { %371 = vmatmul.mubr.msk.bf16.vlgmr.msra.gmra.mxu0 %vm91_vm1, %v410_v9  ;;  %385 = vmatmul.mubr.msk.bf16.vlgmr.msra.gmra.mxu1 %vm91_vm1, %v410_v9  ;;  %p483_p0 = pnand %p482_p13, %p476_p10 }
  0x49   :  { %400 = vset.pattern.permute.xlu0 %v508_v1 }
  0x9c   :  { %v246_v10 = vpop.trf.xlu0 }
  0x9d   :  { %265 = vperm.xlu1 %401, %v246_v10  }
  0xa0   :  { %v247_v11 = vpop.trf.xlu0 }
  0xa1   :  { %268 = vperm.xlu0 %400, %v247_v11  }
  0xe8   :  { %v129_v12 = vpop.f32.mrf.mxu0  ;;  %v172_v13 = vpop.f32.mrf.mxu1 }
  0xea   :  { %v131_v14 = vpop.f32.mrf.mxu0  ;;  %v386_v15 = vpop.f32.mrf.mxu1 }
  0xeb   :  { %v179_v16 = vmax.f32 %v129_v12, %v131_v14 }
  0xec   :  { %v133_v17 = vpop.f32.mrf.mxu0  ;;  %v175_v18 = vpop.f32.mrf.mxu1 }
  0xed   :  { %v181_v19 = vmax.f32 %v179_v16, %v172_v13 }
  0xee   :  { %v135_v20 = vpop.f32.mrf.mxu0  ;;  %v387_v21 = vpop.f32.mrf.mxu1 }
  0xef   :  { %v183_v22 = vsub.f32 %v129_v12, %v181_v19  ;;  %v197_v23 = vsub.f32 %v131_v14, %v181_v19  ;;  %v211_v24 = vsub.f32 %v172_v13, %v181_v19  ;;  %v180_v25 = vmax.f32 %v133_v17, %v135_v20 }
  0xf1   :  { %v185_v26 = vmul.f32 10.0, %v183_v22  ;;  %v199_v27 = vmul.f32 10.0, %v197_v23  ;;  %v213_v28 = vmul.f32 10.0, %v211_v24  ;;  %v182_v29 = vmax.f32 %v180_v25, %v175_v18 }
  0xf3   :  { %v187_v30 = vmul.f32 1.442695, %v185_v26  ;;  %v201_v31 = vmul.f32 1.442695, %v199_v27  ;;  %v184_v32 = vsub.f32 %v133_v17, %v182_v29  ;;  %v215_v33 = vmul.f32 1.442695, %v213_v28 }
  0xf4   :  { %v198_v34 = vsub.f32 %v135_v20, %v182_v29  ;;  %v212_v35 = vsub.f32 %v175_v18, %v182_v29 }
  0xf5   :  { %411 = vpow2.f32 %v187_v30  ;;  %v186_v36 = vmul.f32 10.0, %v184_v32 }
  0xf6   :  { %413 = vpow2.f32 %v201_v31  ;;  %v200_v37 = vmul.f32 10.0, %v198_v34  ;;  %v214_v38 = vmul.f32 10.0, %v212_v35 }
  0xf7   :  { %v189_v39 = vmul.f32 1.442695, %v186_v36  ;;  %415 = vpow2.f32 %v215_v33 }
  0xf8   :  { %v203_v40 = vmul.f32 1.442695, %v200_v37  ;;  %v217_v41 = vmul.f32 1.442695, %v214_v38 }
  0xf9   :  { %417 = vpow2.f32 %v189_v39 }
  0xfa   :  { %419 = vpow2.f32 %v203_v40 }
  0xfb   :  { %421 = vpow2.f32 %v217_v41 }
 0x102   :  { %v412_v42 = vpop.eup %411 }
 0x103   :  { %v414_v43 = vpop.eup %413  ;;  %v193_v52 = vmul.f32 %v412_v42, %v129_v12 }
 0x104   :  { %v205_v44 = vadd.f32 %v414_v43, %v412_v42  ;;  %v416_v45 = vpop.eup %415  ;;  %v207_v53 = vmul.f32 %v414_v43, %v131_v14 }
 0x105   :  { %v221_v58 = vmul.f32 %v416_v45, %v172_v13 }
 0x106   :  { %v418_v46 = vpop.eup %417  ;;  %v219_v47 = vadd.f32 %v416_v45, %v205_v44  ;;  %v209_v55 = vadd.f32 %v207_v53, %v193_v52 }
 0x107   :  { %v420_v48 = vpop.eup %419  ;;  %v194_v56 = vmul.f32 %v418_v46, %v133_v17 }
 0x108   :  { %v206_v49 = vadd.f32 %v420_v48, %v418_v46  ;;  %423 = vrcp.f32 %v219_v47  ;;  %v422_v50 = vpop.eup %421  ;;  %v208_v57 = vmul.f32 %v420_v48, %v135_v20  ;;  %v223_v61 = vadd.f32 %v221_v58, %v209_v55 }
 0x109   :  { %v222_v1 = vmul.f32 %v422_v50, %v175_v18 }
 0x10a   :  { %v220_v51 = vadd.f32 %v422_v50, %v206_v49  ;;  %v210_v62 = vadd.f32 %v208_v57, %v194_v56 }
 0x10c   :  { %425 = vrcp.f32 %v220_v51  ;;  %v224_v5 = vadd.f32 %v222_v1, %v210_v62 }
 0x115   :  { %v424_v60 = vpop.eup %423 }
 0x116   :  { %v226_v2 = vmul.f32 %v424_v60, %v223_v61 }
 0x118   :  { %v266_v63 = vpop.permute.xlu1 %265 }
 0x119   :  { %vm270_vm2 = vcmp.eq.s32.totalorder %v263_v59, %v266_v63  ;;  %v426_v4 = vpop.eup %425 }
 0x11a   :  { %v373_v3 = vsel %vm270_vm2, 1.0, %v507_v0  ;;  %v228_v9 = vmul.f32 %v426_v4, %v224_v5 }
 0x11b   :  { %v305_v6 = vmul.f32 %v373_v3, %v226_v2  ;;  %v277_v8 = vmul.f32 0.01, %v373_v3 }
 0x11c   :  { %v269_v7 = vpop.permute.xlu0 %268 }
 0x11d   :  { %vm271_vm3 = vcmp.eq.s32.totalorder %v263_v59, %v269_v7  ;;  %v279_v14 = vsub.f32 %v226_v2, %v277_v8 }
 0x11e   :  { %v374_v10 = vsel %vm271_vm3, 1.0, %v507_v0 }
 0x11f   :  { %v278_v11 = vmul.f32 0.01, %v374_v10  ;;  %v306_v12 = vmul.f32 %v374_v10, %v228_v9  ;;  %v281_v17 = vmul.f32 20.0, %v279_v14 }
 0x121   :  { %309 = vadd.xlane.f32.xlu0 %v306_v12  ;;  %v280_v13 = vsub.f32 %v228_v9, %v278_v11  ;;  %v283_v18 = vsel %vm276_vm4, %v281_v17, -1e+30 }
 0x123   :  { %v282_v15 = vmul.f32 20.0, %v280_v13 }
 0x125   :  { %v284_v16 = vsel %vm276_vm4, %v282_v15, -1e+30 }
 0x126   :  { %287 = vmax.xlane.f32.xlu1 %v284_v16 }
 0x12a   :  { %285 = vmax.xlane.f32.xlu1 %v283_v18 }
 0x1aa   :  { %v310_v28 = vpop.xlane.xlu0 %309 }
 0x1ab   :  { %v376_v29 = vadd.f32 -0.01, %v310_v28 }
 0x1ad   :  { %v314_v33 = vmul.f32 20.0, %v376_v29 }
 0x1af   :  { %v288_v19 = vpop.xlane.xlu1 %287 }
 0x1b0   :  { %v290_v20 = vsub.f32 %v284_v16, %v288_v19 }
 0x1b2   :  { %v293_v21 = vmul.f32 1.442695, %v290_v20 }
 0x1b3   :  { %v286_v22 = vpop.xlane.xlu1 %285 }
 0x1b4   :  { %427 = vpow2.f32 %v293_v21  ;;  %v289_v23 = vsub.f32 %v283_v18, %v286_v22 }
 0x1b6   :  { %v291_v24 = vmul.f32 1.442695, %v289_v23 }
 0x1b8   :  { %429 = vpow2.f32 %v291_v24 }
 0x1c1   :  { %v428_v0 = vpop.eup %427 }
 0x1c2   :  { %297 = vadd.xlane.f32.xlu1 %v428_v0 }
 0x1c5   :  { %v430_v25 = vpop.eup %429 }
 0x1c6   :  { %295 = vadd.xlane.f32.xlu1 %v430_v25 }
 0x1ca   :  { %307 = vadd.xlane.f32.xlu1 %v305_v6 }
 0x24b   :  { %v298_v26 = vpop.xlane.xlu1 %297 }
 0x24c   :  { %431 = vlog2.f32 %v298_v26 }
 0x24f   :  { %v296_v27 = vpop.xlane.xlu1 %295 }
 0x250   :  { %433 = vlog2.f32 %v296_v27 }
 0x253   :  { %v308_v31 = vpop.xlane.xlu1 %307 }
 0x254   :  { %v375_v35 = vadd.f32 -0.01, %v308_v31 }
 0x256   :  { %v313_v40 = vmul.f32 20.0, %v375_v35 }
 0x259   :  { %v432_v30 = vpop.eup %431 }
 0x25a   :  { %v302_v32 = vmul.f32 0.6931472, %v432_v30 }
 0x25c   :  { %v304_v34 = vadd.f32 %v302_v32, %v288_v19 }
 0x25d   :  { %v434_v36 = vpop.eup %433 }
 0x25e   :  { %v300_v37 = vmul.f32 0.6931472, %v434_v36  ;;  %v329_v38 = vsub.f32 %v304_v34, %v314_v33 }
 0x260   :  { %v303_v39 = vadd.f32 %v300_v37, %v286_v22  ;;  %v331_v41 = vmul.f32 0.0, %v329_v38 }
 0x262   :  { %v328_v42 = vsub.f32 %v303_v39, %v313_v40  ;;  %v334_v44 = vsel %vm332_vm5, %v331_v41, 0.0 }
 0x264   :  { %v333_v43 = vsel %vm332_vm5, %v328_v42, 0.0 }
 0x265   :  { %v335_v45 = vadd.f32 %v334_v44, %v333_v43 }
 0x267   :  { %336 = vadd.xlane.f32.xlu1 %v335_v45 }
 0x2f0   :  { %v337_v46 = vpop.xlane.xlu1 %336 }
 0x2f1   :  { %v338_v47 = vrot.slane %v337_v46, 4 }
 0x2f3   :  { %v339_v48 = vadd.f32 %v338_v47, %v337_v46 }
 0x2f5   :  { %v340_v49 = vrot.slane %v339_v48, 2 }
 0x2f7   :  { %v341_v50 = vadd.f32 %v340_v49, %v339_v48 }
 0x2f9   :  { %v342_v51 = vrot.slane %v341_v50, 1 }
 0x2fb   :  { %v343_v52 = vadd.f32 %v342_v51, %v341_v50 }
 0x2fd   :  { %388 = vpush %v343_v52 }
 0x32e   :  { %s389_s27 = spop %388 }
 0x32f   :  { %s345_s28 = smul.f32 0.125, %s389_s27 }
 0x331   :  { %v346_v53 = vstv %s345_s28 }
 0x332   :  { %347 = vst [vmem:[#allocation7] sm:$0xff] %v346_v53 }
 0x333   :  { %486 = shalt.err (!%p483_p0)
}
 0x334   :  { %357 = dma.vmem_to_hbm [thread:$0]  %s355_s2, 128, %s551_s3, [#allocation4]  }
 0x335   :  { %499 = dma.done.wait [#allocation4], 128  }
 0x336   :  { %500 = vsyncadd [#allocation4], 4294967168 }
 0x337   :  { %361 = vsyncpa [#allocation3], 1 }
 0x338   :  { %362 = vsyncpa [#allocation6], 1 }
 0x339   :  { %363 = vsyncpa [#allocation4], 1 }

</bundles_post_ra>
